<compile_context>
chip_gen: v7x
topology: tpu7x:2x2x1
jax: 0.10.0
libtpu: 0.0.40
codegen_flags: <defaults>
</compile_context>

<pallas_src>
import functools
import math

import jax
import jax.numpy as jnp
from jax import lax
from jax.experimental import pallas as pl
from jax.experimental.pallas import tpu as pltpu

_VMEM_LIMIT = 64 * 1024 * 1024  # <= physical VMEM on v5e/v6e/v7x


# ----------------------- fused linear (matmul + bias) -----------------------

def _linear_kernel_single_k(x_ref, w_ref, b_ref, o_ref):
    # x_ref: (tm, K)  w_ref: (K, tn)  b_ref: (1, tn)  o_ref: (tm, tn)
    o_ref[...] = (jnp.dot(x_ref[...], w_ref[...],
                          preferred_element_type=jnp.float32)
                  + b_ref[...]).astype(o_ref.dtype)


def _linear_kernel_multi_k(x_ref, w_ref, b_ref, o_ref, acc_ref):
    k = pl.program_id(2)

    @pl.when(k == 0)
    def _():
        acc_ref[...] = jnp.zeros_like(acc_ref)

    acc_ref[...] += jnp.dot(x_ref[...], w_ref[...],
                            preferred_element_type=jnp.float32)

    @pl.when(k == pl.num_programs(2) - 1)
    def _():
        o_ref[...] = (acc_ref[...] + b_ref[...]).astype(o_ref.dtype)


def linear_pallas(x, w, b, *, out_dtype=None, tm=256, tn=256, tk=256):
    """y = x @ w + b.  x: (M, K), w: (K, N), b: (N,).  bf16 MXU, f32 accum."""
    M, K = x.shape
    K2, N = w.shape
    assert K == K2
    out_dtype = out_dtype or x.dtype
    tm = min(tm, M)
    tn = min(tn, N)
    tk = min(tk, K)
    assert M % tm == 0 and N % tn == 0 and K % tk == 0, (M, N, K, tm, tn, tk)

    x_bf = x.astype(jnp.bfloat16)
    w_bf = w.astype(jnp.bfloat16)
    b2 = b.reshape(1, N).astype(jnp.float32)

    if K == tk:  # single contraction block: skip the accumulator round trip
        grid = (M // tm, N // tn)
        return pl.pallas_call(
            _linear_kernel_single_k,
            out_shape=jax.ShapeDtypeStruct((M, N), out_dtype),
            grid_spec=pltpu.PrefetchScalarGridSpec(
                num_scalar_prefetch=0,
                grid=grid,
                in_specs=[
                    pl.BlockSpec((tm, K), lambda i, j: (i, 0)),
                    pl.BlockSpec((K, tn), lambda i, j: (0, j)),
                    pl.BlockSpec((1, tn), lambda i, j: (0, j)),
                ],
                out_specs=pl.BlockSpec((tm, tn), lambda i, j: (i, j))),
            compiler_params=pltpu.CompilerParams(
                dimension_semantics=("parallel", "parallel"),
                vmem_limit_bytes=_VMEM_LIMIT),
        )(x_bf, w_bf, b2)

    grid = (M // tm, N // tn, K // tk)
    return pl.pallas_call(
        _linear_kernel_multi_k,
        out_shape=jax.ShapeDtypeStruct((M, N), out_dtype),
        grid_spec=pltpu.PrefetchScalarGridSpec(
            num_scalar_prefetch=0,
            grid=grid,
            in_specs=[
                pl.BlockSpec((tm, tk), lambda i, j, k: (i, k)),
                pl.BlockSpec((tk, tn), lambda i, j, k: (k, j)),
                pl.BlockSpec((1, tn), lambda i, j, k: (0, j)),
            ],
            out_specs=pl.BlockSpec((tm, tn), lambda i, j, k: (i, j)),
            scratch_shapes=[pltpu.VMEM((tm, tn), jnp.float32)]),
        compiler_params=pltpu.CompilerParams(
            dimension_semantics=("parallel", "parallel", "arbitrary"),
            vmem_limit_bytes=_VMEM_LIMIT),
    )(x_bf, w_bf, b2)


# ---------------- cross-attention, KV resident in VMEM ----------------------
# q: (Lq, C) bf16 (scale already folded into Wq), k/v: (Lkv, C) bf16.
# Per q tile: for each head do two 2-D MXU matmuls + single-pass softmax;
# results are merged back to a lane-dense (tq, C) output block.

def _xattn_kernel(q_ref, k_ref, v_ref, o_ref, *, num_heads, head_dim):
    H, D = num_heads, head_dim
    q_all = q_ref[...]          # (tq, C) bf16
    k_all = k_ref[...]          # (Lkv, C) bf16, resident across the grid
    v_all = v_ref[...]          # (Lkv, C) bf16
    outs = []
    for h in range(H):
        qh = q_all[:, h * D:(h + 1) * D]          # (tq, D)
        kh = k_all[:, h * D:(h + 1) * D]          # (Lkv, D)
        vh = v_all[:, h * D:(h + 1) * D]          # (Lkv, D)
        # s = qh @ kh^T  (contraction over D), f32 accumulate on MXU.
        s = lax.dot_general(qh, kh, (((1,), (1,)), ((), ())),
                            preferred_element_type=jnp.float32)   # (tq, Lkv)
        m = jnp.max(s, axis=-1, keepdims=True)
        p = jnp.exp(s - m)
        l = jnp.sum(p, axis=-1, keepdims=True)
        oh = jnp.dot(p.astype(vh.dtype), vh,
                     preferred_element_type=jnp.float32)           # (tq, D)
        outs.append(oh * pl.reciprocal(l, approx=True))
    # Lane-dense (tq, C) store.
    o_ref[...] = jnp.concatenate(outs, axis=-1).astype(o_ref.dtype)


def cross_attention_pallas(q, k, v, *, num_heads, tq=256):
    """Unmasked cross attention, head-interleaved layout.

    q: (Lq, C), k/v: (Lkv, C); 1/sqrt(D) scale must already be folded into q.
    Returns (Lq, C) bf16.
    """
    Lq, C = q.shape
    Lkv, Ck = k.shape
    assert Ck == C and C % num_heads == 0
    D = C // num_heads
    tq = min(tq, Lq)
    assert Lq % tq == 0, (Lq, tq)

    kernel = functools.partial(_xattn_kernel, num_heads=num_heads, head_dim=D)
    return pl.pallas_call(
        kernel,
        out_shape=jax.ShapeDtypeStruct((Lq, C), jnp.bfloat16),
        grid_spec=pltpu.PrefetchScalarGridSpec(
            num_scalar_prefetch=0,
            grid=(Lq // tq,),
            in_specs=[
                pl.BlockSpec((tq, C), lambda i: (i, 0)),
                pl.BlockSpec((Lkv, C), lambda i: (0, 0)),   # K resident
                pl.BlockSpec((Lkv, C), lambda i: (0, 0)),   # V resident
            ],
            out_specs=pl.BlockSpec((tq, C), lambda i: (i, 0))),
        compiler_params=pltpu.CompilerParams(
            dimension_semantics=("parallel",),
            vmem_limit_bytes=_VMEM_LIMIT),
    )(q.astype(jnp.bfloat16), k.astype(jnp.bfloat16), v.astype(jnp.bfloat16))


# ------------------------- module forward (wrappers) ------------------------

def make_params(key, d_model):
    """Weights stored as (in, out) so y = x @ w + b (== x @ W_torch^T + b)."""
    ks = jax.random.split(key, 6)
    sc = 1.0 / math.sqrt(d_model)
    return {
        'wq': sc * jax.random.normal(ks[0], (d_model, d_model), jnp.float32),
        'bq': 0.01 * jax.random.normal(ks[1], (d_model,), jnp.float32),
        'wkv': sc * jax.random.normal(ks[2], (d_model, 2 * d_model),
                                      jnp.float32),
        'bkv': 0.01 * jax.random.normal(ks[3], (2 * d_model,), jnp.float32),
        'wp': sc * jax.random.normal(ks[4], (d_model, d_model), jnp.float32),
        'bp': 0.01 * jax.random.normal(ks[5], (d_model,), jnp.float32),
    }


def mh_t2v_cross_attention_pallas(x, cond, params, num_heads):
    """x: (B, T, N, C), cond: (B, M, C) -> (B, T, N, C).  mask=None path."""
    B, T, N, C = x.shape
    Bc, M, Cc = cond.shape
    assert Cc == C and C % num_heads == 0
    H = num_heads
    D = C // H
    Lq = B * T * N
    Lkv = Bc * M
    scale = 1.0 / math.sqrt(D)

    # Fold the attention scale into Wq/bq; split Wkv into k/v halves host-side
    # (columns [:C] are K, [C:] are V, matching torch's view(...,2,H,D).unbind).
    wq_s = params['wq'] * scale
    bq_s = params['bq'] * scale
    wk, wv = params['wkv'][:, :C], params['wkv'][:, C:]
    bk, bv = params['bkv'][:C], params['bkv'][C:]

    q = linear_pallas(x.reshape(Lq, C), wq_s, bq_s, out_dtype=jnp.bfloat16)
    k = linear_pallas(cond.reshape(Lkv, C), wk, bk, out_dtype=jnp.bfloat16)
    v = linear_pallas(cond.reshape(Lkv, C), wv, bv, out_dtype=jnp.bfloat16)

    o = cross_attention_pallas(q, k, v, num_heads=H)        # (Lq, C) bf16

    out = linear_pallas(o, params['wp'], params['bp'], out_dtype=x.dtype)
    return out.reshape(B, T, N, C)


def mh_t2v_cross_attention_ref(x, cond, params, num_heads):
    """Pure-JAX f32 reference (mask=None, dropout=0)."""
    B, T, N, C = x.shape
    H = num_heads
    D = C // H
    q = x.reshape(-1, C) @ params['wq'] + params['bq']
    kv = cond.reshape(-1, C) @ params['wkv'] + params['bkv']
    q = q.reshape(-1, H, D)
    kv = kv.reshape(-1, 2, H, D)
    k, v = kv[:, 0], kv[:, 1]
    logits = jnp.einsum('qhd,khd->hqk', q, k) / math.sqrt(D)
    p = jax.nn.softmax(logits, axis=-1)
    o = jnp.einsum('hqk,khd->qhd', p, v).reshape(-1, C)
    out = o @ params['wp'] + params['bp']
    return out.reshape(B, T, N, C)


if __name__ == "__main__":
    key = jax.random.PRNGKey(0)
    key, kx, kc, kp = jax.random.split(key, 4)

    # Small but tile-aligned shapes: B*T*N = 128 queries, B*M = 128 kv tokens.
    B, T, N, C = 2, 2, 32, 128
    M = 64
    num_heads = 4

    x = jax.random.normal(kx, (B, T, N, C), jnp.float32)
    cond = jax.random.normal(kc, (B, M, C), jnp.float32)
    params = make_params(kp, C)

    out = mh_t2v_cross_attention_pallas(x, cond, params, num_heads)
    out = jax.block_until_ready(out)

    out_ref = mh_t2v_cross_attention_ref(x, cond, params, num_heads)
    assert out.shape == (B, T, N, C), out.shape
    err = float(jnp.max(jnp.abs(out - out_ref)))
    # bf16 MXU operands (f32 accumulation) vs pure-f32 reference.
    assert err < 5e-2, f"max abs err {err}"

    print("KERNEL_OK")
</pallas_src>

<mosaic_0001>
module attributes {stable_mosaic.version = 11 : i64} {
  func.func @_linear_kernel_single_k(%arg0: i32, %arg1: i32, %arg2: memref<128x128xbf16, #tpu.memory_space<vmem>>, %arg3: memref<128x128xbf16, #tpu.memory_space<vmem>>, %arg4: memref<1x128xf32, #tpu.memory_space<vmem>>, %arg5: memref<128x128xbf16, #tpu.memory_space<vmem>>) attributes {dimension_semantics = [#tpu.dimension_semantics<parallel>, #tpu.dimension_semantics<parallel>], iteration_bounds = array<i64: 1, 1>, scalar_prefetch = 0 : i64, scratch_operands = 0 : i64, tpu.core_type = #tpu.core_type<tc>, window_params = [{transform_indices = @transform_0, window_bounds = array<i64: 128, 128>}, {transform_indices = @transform_1, window_bounds = array<i64: 128, 128>}, {transform_indices = @transform_2, window_bounds = array<i64: 1, 128>}, {transform_indices = @transform_3, window_bounds = array<i64: 128, 128>}]} {
    %c0 = arith.constant 0 : index
    %c0_0 = arith.constant 0 : index
    %0 = vector.load %arg2[%c0, %c0_0] : memref<128x128xbf16, #tpu.memory_space<vmem>>, vector<128x128xbf16>
    %c0_1 = arith.constant 0 : index
    %c0_2 = arith.constant 0 : index
    %1 = vector.load %arg3[%c0_1, %c0_2] : memref<128x128xbf16, #tpu.memory_space<vmem>>, vector<128x128xbf16>
    %cst = arith.constant dense<0.000000e+00> : vector<128x128xf32>
    %2 = tpu.matmul %0, %1, %cst {dimension_numbers = #tpu.dot_dimension_numbers<[1], [0], [0], [1], [0, 0, 1, 1], [], []>} : vector<128x128xbf16>, vector<128x128xbf16>, vector<128x128xf32> -> vector<128x128xf32>
    %c0_3 = arith.constant 0 : index
    %c0_4 = arith.constant 0 : index
    %3 = vector.load %arg4[%c0_3, %c0_4] : memref<1x128xf32, #tpu.memory_space<vmem>>, vector<1x128xf32>
    %4 = vector.broadcast %3 : vector<1x128xf32> to vector<128x128xf32>
    %5 = arith.addf %2, %4 : vector<128x128xf32>
    %6 = arith.truncf %5 : vector<128x128xf32> to vector<128x128xbf16>
    %c0_5 = arith.constant 0 : index
    %c0_6 = arith.constant 0 : index
    %7 = vector.load %arg5[%c0_5, %c0_6] : memref<128x128xbf16, #tpu.memory_space<vmem>>, vector<128x128xbf16>
    tpu.vector_store %arg5[%c0_5, %c0_6], %6 {strides = array<i32>} : memref<128x128xbf16, #tpu.memory_space<vmem>>, vector<128x128xbf16>,
    return
  }
  func.func @transform_0(%arg0: i32, %arg1: i32) -> (i32, i32) {
    %c0_i32 = arith.constant 0 : i32
    %c0_i32_0 = arith.constant 0 : i32
    return %arg0, %c0_i32 : i32, i32
  }
  func.func @transform_1(%arg0: i32, %arg1: i32) -> (i32, i32) {
    %c0_i32 = arith.constant 0 : i32
    %c0_i32_0 = arith.constant 0 : i32
    return %c0_i32, %arg1 : i32, i32
  }
  func.func @transform_2(%arg0: i32, %arg1: i32) -> (i32, i32) {
    %c0_i32 = arith.constant 0 : i32
    %c0_i32_0 = arith.constant 0 : i32
    return %c0_i32, %arg1 : i32, i32
  }
  func.func @transform_3(%arg0: i32, %arg1: i32) -> (i32, i32) {
    %c0_i32 = arith.constant 0 : i32
    return %arg0, %arg1 : i32, i32
  }
}

</mosaic_0001>

<bundles_post_ra>
// kernel: tpu_custom_call.1
= control target key start
LH: loop header
LB: loop body
LE: loop exit
PB: predicated region body
PF: predicated region fallthrough
CT: control target
= control target key end

     0   :  { %8 = vsyncpa [#allocation3], 0  ;;  %s751_s0 = inlined_call_operand.hbm [shape: bf16[128,128], index: 0, kind: input, shape index: {}]   ;;  %s752_s1 = inlined_call_operand.hbm [shape: bf16[128,128], index: 1, kind: input, shape index: {}]   ;;  %s753_s2 = inlined_call_operand.hbm [shape: f32[1,128], index: 2, kind: input, shape index: {}]   ;;  %s754_s3 = inlined_call_operand.hbm [shape: bf16[128,128], index: 3, kind: output, shape index: {}]  }
   0x1   :  { %9 = vsyncpa [#allocation6], 0 }
   0x2   :  { %10 = vsyncpa [#allocation4], 0  ;;  %s661_s12 = smov [#allocation5]   ;;  %s662_s14 = smov [#allocation2]  }
   0x3   :  { %s28_s13 = sshll.u32 %s661_s12, 4  ;;  %s16_s15 = sshll.u32 %s662_s14, 4  ;;  %s29_s13 = int_to_ptr.vmem [resolvable:$true] %s28_s13  ;;  %s687_s15 = int_to_ptr.vmem [resolvable:$true] %s16_s15 }
   0x4   :  { %s567_s18 = scalar_lea.hbm %s752_s1, 1024 }
   0x5   :  { %p568_p0 = scmp.ne.s32.totalorder %s752_s1, %s567_s18  ;;  %p571_p1 = scmp.lt.u32.totalorder %s567_s18, %s752_s1 }
   0x7   :  { %p573_p2 = pnand %p571_p1, %p568_p0 }
   0x9   :  { %576 = shalt.err (!%p573_p2)
}
   0xa   :  { %s577_s23 = scalar_lea.vmem %s29_s13, 1024  ;;  %p582_p4 = scmp.lt.s32.totalorder %s29_s13, %s29_s13 }
   0xb   :  { %p578_p3 = scmp.ne.s32.totalorder %s29_s13, %s577_s23  ;;  %p583_p5 = scmp.lt.s32.totalorder %s577_s23, %s577_s23 }
   0xd   :  { %p584_p6 = por %p583_p5, %p582_p4 }
   0xf   :  { %p585_p7 = pnand %p584_p6, %p578_p3 }
  0x11   :  { %588 = shalt.err (!%p585_p7)
}
  0x12   :  { %s663_s24 = smov 64   ;;  %s664_s25 = smov 4  }
  0x13   :  { %34 = dma.hbm_to_vmem [thread:$0]  %s752_s1, 1024, %s29_s13, [#allocation6], %s663_s24, %s663_s24, %s664_s25  }
  0x14   :  { %s589_s30 = scalar_lea.hbm %s751_s0, 1024 }
  0x15   :  { %p590_p8 = scmp.ne.s32.totalorder %s751_s0, %s589_s30  ;;  %p593_p9 = scmp.lt.u32.totalorder %s589_s30, %s751_s0 }
  0x17   :  { %p595_p10 = pnand %p593_p9, %p590_p8 }
  0x19   :  { %598 = shalt.err (!%p595_p10)
}
  0x1a   :  { %s599_s8 = scalar_lea.vmem %s687_s15, 1024  ;;  %p604_p12 = scmp.lt.s32.totalorder %s687_s15, %s687_s15 }
  0x1b   :  { %p600_p11 = scmp.ne.s32.totalorder %s687_s15, %s599_s8  ;;  %p605_p13 = scmp.lt.s32.totalorder %s599_s8, %s599_s8 }
  0x1d   :  { %p606_p0 = por %p605_p13, %p604_p12 }
  0x1f   :  { %p607_p1 = pnand %p606_p0, %p600_p11 }
  0x21   :  { %610 = shalt.err (!%p607_p1)
}
  0x22   :  { %22 = dma.hbm_to_vmem [thread:$0]  %s751_s0, 1024, %s687_s15, [#allocation3], %s663_s24, %s663_s24, %s664_s25  }
  0x23   :  { %s665_s10 = smov [#allocation7]   ;;  %s611_s14 = scalar_lea.hbm %s753_s2, 16 }
  0x24   :  { %s41_s11 = sshll.u32 %s665_s10, 4  ;;  %p612_p2 = scmp.ne.s32.totalorder %s753_s2, %s611_s14  ;;  %s42_s11 = int_to_ptr.vmem [resolvable:$true] %s41_s11 }
  0x25   :  { %p615_p3 = scmp.lt.u32.totalorder %s611_s14, %s753_s2 }
  0x27   :  { %p617_p4 = pnand %p615_p3, %p612_p2 }
  0x29   :  { %620 = shalt.err (!%p617_p4)
}
  0x2a   :  { %s621_s20 = scalar_lea.vmem %s42_s11, 16  ;;  %s625_s0 = scalar_lea.vmem %s42_s11, 32 }
  0x2b   :  { %p622_p5 = scmp.ne.s32.totalorder %s42_s11, %s621_s20  ;;  %p626_p6 = scmp.lt.s32.totalorder %s42_s11, %s42_s11 }
  0x2c   :  { %p627_p7 = scmp.lt.s32.totalorder %s625_s0, %s621_s20 }
  0x2e   :  { %p628_p8 = por %p627_p7, %p626_p6 }
  0x30   :  { %p629_p9 = pnand %p628_p8, %p622_p5 }
  0x32   :  { %632 = shalt.err (!%p629_p9)
}
  0x33   :  { %44 = dma.hbm_to_vmem [thread:$0]  %s753_s2, 16, %s42_s11, [#allocation6]  }
  0x34   :  { %655 = dma.done.wait [#allocation3], 1024  }
  0x35   :  { %656 = vsyncadd [#allocation3], 4294966272 }
  0x36   :  { %657 = dma.done.wait [#allocation6], 1040  }
  0x37   :  { %658 = vsyncadd [#allocation6], 4294966256  ;;  %v551_v0 = vld [vmem:[#allocation5] sm:$0xff]   ;;  %v552_v1 = vld [vmem:[#allocation5 + $0x8] sm:$0xff]   ;;  %s666_s2 = smov [#allocation8]  }
  0x38   :  { %497 = vmatprep.subr.bf16.mxu0 %v551_v0  ;;  %529 = vmatprep.subr.bf16.mxu1 %v551_v0  ;;  %v553_v2 = vld [vmem:[#allocation5 + $0x10] sm:$0xff]   ;;  %v554_v3 = vld [vmem:[#allocation5 + $0x18] sm:$0xff]   ;;  %v559_v4 = vld [vmem:[#allocation2] sm:$0xff]   ;;  %s372_s22 = sshll.u32 %s666_s2, 4  ;;  %s373_s22 = int_to_ptr.vmem [resolvable:$true] %s372_s22 }
  0x39   :  { %498 = vmatpush3.bf16.msra.mxu0 %v551_v0  ;;  %537 = vmatpush3.bf16.msra.mxu1 %v551_v0  ;;  %v560_v5 = vld [vmem:[#allocation2 + $0x20] sm:$0xff]   ;;  %v556_v7 = vld [vmem:[#allocation5 + $0x28] sm:$0xff]   ;;  %v557_v8 = vld [vmem:[#allocation5 + $0x30] sm:$0xff]   ;;  %s633_s23 = scalar_lea.vmem %s373_s22, 1024  ;;  %p638_p11 = scmp.lt.s32.totalorder %s373_s22, %s373_s22 }
  0x3a   :  { %499 = vmatprep.subr.bf16.mxu0 %v552_v1  ;;  %530 = vmatprep.subr.bf16.mxu1 %v552_v1  ;;  %v555_v6 = vld [vmem:[#allocation5 + $0x20] sm:$0xff]   ;;  %v558_v9 = vld [vmem:[#allocation5 + $0x38] sm:$0xff]   ;;  %v561_v10 = vld [vmem:[#allocation2 + $0x8] sm:$0xff]   ;;  %p634_p10 = scmp.ne.s32.totalorder %s373_s22, %s633_s23  ;;  %p639_p12 = scmp.lt.s32.totalorder %s633_s23, %s633_s23 }
  0x3b   :  { %513 = vmatprep.mubr.bf16.mxu0 %v559_v4  ;;  %521 = vmatprep.mubr.bf16.mxu1 %v560_v5  ;;  %v562_v11 = vld [vmem:[#allocation2 + $0x28] sm:$0xff]   ;;  %v563_v12 = vld [vmem:[#allocation2 + $0x10] sm:$0xff]   ;;  %v565_v14 = vld [vmem:[#allocation2 + $0x18] sm:$0xff]  }
  0x3c   :  { %v564_v13 = vld [vmem:[#allocation2 + $0x30] sm:$0xff]   ;;  %v566_v15 = vld [vmem:[#allocation2 + $0x38] sm:$0xff]   ;;  %v385_v17 = vld [vmem:[#allocation7] ss:$0 sm:$0xff]  ;;  %p640_p13 = por %p639_p12, %p638_p11 }
  0x3d   :  { %500 = vmatpush3.bf16.msra.mxu0 %v552_v1  ;;  %538 = vmatpush3.bf16.msra.mxu1 %v552_v1 }
  0x3e   :  { %501 = vmatprep.subr.bf16.mxu0 %v553_v2  ;;  %531 = vmatprep.subr.bf16.mxu1 %v553_v2  ;;  %p641_p0 = pnand %p640_p13, %p634_p10 }
  0x41   :  { %502 = vmatpush3.bf16.msra.mxu0 %v553_v2  ;;  %539 = vmatpush3.bf16.msra.mxu1 %v553_v2 }
  0x42   :  { %503 = vmatprep.subr.bf16.mxu0 %v554_v3  ;;  %532 = vmatprep.subr.bf16.mxu1 %v554_v3 }
  0x45   :  { %504 = vmatpush3.bf16.msra.mxu0 %v554_v3  ;;  %540 = vmatpush3.bf16.msra.mxu1 %v554_v3 }
  0x46   :  { %505 = vmatprep.subr.bf16.mxu0 %v555_v6  ;;  %533 = vmatprep.subr.bf16.mxu1 %v555_v6 }
  0x49   :  { %506 = vmatpush3.bf16.msra.mxu0 %v555_v6  ;;  %541 = vmatpush3.bf16.msra.mxu1 %v555_v6 }
  0x4a   :  { %507 = vmatprep.subr.bf16.mxu0 %v556_v7  ;;  %534 = vmatprep.subr.bf16.mxu1 %v556_v7 }
  0x4d   :  { %508 = vmatpush3.bf16.msra.mxu0 %v556_v7  ;;  %542 = vmatpush3.bf16.msra.mxu1 %v556_v7 }
  0x4e   :  { %509 = vmatprep.subr.bf16.mxu0 %v557_v8  ;;  %535 = vmatprep.subr.bf16.mxu1 %v557_v8 }
  0x51   :  { %510 = vmatpush3.bf16.msra.mxu0 %v557_v8  ;;  %543 = vmatpush3.bf16.msra.mxu1 %v557_v8 }
  0x52   :  { %511 = vmatprep.subr.bf16.mxu0 %v558_v9  ;;  %536 = vmatprep.subr.bf16.mxu1 %v558_v9 }
  0x55   :  { %512 = vmatpush3.bf16.msra.mxu0 %v558_v9  ;;  %544 = vmatpush3.bf16.msra.mxu1 %v558_v9 }
  0x58   :  { %514 = vmatmul.mubr.bf16.vlgmr.msra.gmra.mrb[0].mxu0 %v561_v10  ;;  %522 = vmatmul.mubr.bf16.vlgmr.msra.gmra.mrb[0].mxu1 %v562_v11 }
  0x59   :  { %517 = vmatprep.mubr.bf16.mxu0 %v563_v12  ;;  %525 = vmatprep.mubr.bf16.mxu1 %v564_v13 }
  0x60   :  { %518 = vmatmul.mubr.bf16.gmra.mrb[4].mxu0 %v565_v14  ;;  %526 = vmatmul.mubr.bf16.gmra.mrb[4].mxu1 %v566_v15 }
 0x12b   :  { %v515_v16 = vpop.f32.mrb[0].mxu0  ;;  %v523_v18 = vpop.f32.mrb[0].mxu1 }
 0x12c   :  { %v224_v19 = vpop.f32.mrb[1].mxu0  ;;  %v256_v20 = vpop.f32.mrb[1].mxu1  ;;  %v233_v23 = vadd.f32 %v515_v16, %v385_v17  ;;  %v265_v24 = vadd.f32 %v523_v18, %v385_v17 }
 0x12d   :  { %v516_v21 = vpop.f32.mrb[2].mxu0  ;;  %v524_v22 = vpop.f32.mrb[2].mxu1  ;;  %v225_v29 = vadd.f32 %v385_v17, %v224_v19  ;;  %v257_v30 = vadd.f32 %v385_v17, %v256_v20 }
 0x12e   :  { %v236_v25 = vadd.f32 %v516_v21, %v385_v17  ;;  %v268_v26 = vadd.f32 %v524_v22, %v385_v17  ;;  %v227_v27 = vpop.f32.mrb[3].mxu0  ;;  %v259_v28 = vpop.f32.mrb[3].mxu1 }
 0x12f   :  { %v228_v31 = vadd.f32 %v385_v17, %v227_v27  ;;  %v260_v32 = vadd.f32 %v385_v17, %v259_v28 }
 0x130   :  { %v442_v33 = vpack.c.bf16 %v236_v25, %v233_v23  ;;  %v462_v34 = vpack.c.bf16 %v268_v26, %v265_v24 }
 0x131   :  { %v437_v35 = vpack.c.bf16 %v228_v31, %v225_v29  ;;  %v457_v36 = vpack.c.bf16 %v260_v32, %v257_v30 }
 0x132   :  { %474 = vst [vmem:[#allocation8 + $0x8] sm:$0xff] %v442_v33   ;;  %478 = vst [vmem:[#allocation8 + $0x28] sm:$0xff] %v462_v34  }
 0x133   :  { %438 = vst [vmem:[#allocation8] sm:$0xff] %v437_v35   ;;  %477 = vst [vmem:[#allocation8 + $0x20] sm:$0xff] %v457_v36   ;;  %v519_v37 = vpop.f32.mrb[4].mxu0  ;;  %v527_v38 = vpop.f32.mrb[4].mxu1 }
 0x134   :  { %v240_v39 = vpop.f32.mrb[5].mxu0  ;;  %v272_v40 = vpop.f32.mrb[5].mxu1  ;;  %v249_v43 = vadd.f32 %v519_v37, %v385_v17  ;;  %v281_v44 = vadd.f32 %v527_v38, %v385_v17 }
 0x135   :  { %v520_v41 = vpop.f32.mrb[6].mxu0  ;;  %v528_v42 = vpop.f32.mrb[6].mxu1  ;;  %v241_v49 = vadd.f32 %v385_v17, %v240_v39  ;;  %v273_v50 = vadd.f32 %v385_v17, %v272_v40 }
 0x136   :  { %v252_v45 = vadd.f32 %v520_v41, %v385_v17  ;;  %v284_v46 = vadd.f32 %v528_v42, %v385_v17  ;;  %v243_v47 = vpop.f32.mrb[7].mxu0  ;;  %v275_v48 = vpop.f32.mrb[7].mxu1 }
 0x137   :  { %v244_v51 = vadd.f32 %v385_v17, %v243_v47  ;;  %v276_v52 = vadd.f32 %v385_v17, %v275_v48 }
 0x138   :  { %v452_v53 = vpack.c.bf16 %v252_v45, %v249_v43  ;;  %v472_v54 = vpack.c.bf16 %v284_v46, %v281_v44 }
 0x139   :  { %v447_v55 = vpack.c.bf16 %v244_v51, %v241_v49  ;;  %v467_v56 = vpack.c.bf16 %v276_v52, %v273_v50 }
 0x13a   :  { %476 = vst [vmem:[#allocation8 + $0x18] sm:$0xff] %v452_v53   ;;  %480 = vst [vmem:[#allocation8 + $0x38] sm:$0xff] %v472_v54  }
 0x13b   :  { %475 = vst [vmem:[#allocation8 + $0x10] sm:$0xff] %v447_v55   ;;  %479 = vst [vmem:[#allocation8 + $0x30] sm:$0xff] %v467_v56  }
 0x13c   :  { %644 = shalt.err (!%p641_p0)
}
 0x13d   :  { %s645_s28 = scalar_lea.hbm %s754_s3, 1024 }
 0x13e   :  { %p646_p1 = scmp.ne.s32.totalorder %s754_s3, %s645_s28  ;;  %p649_p2 = scmp.lt.u32.totalorder %s645_s28, %s754_s3 }
 0x140   :  { %p651_p3 = pnand %p649_p2, %p646_p1 }
 0x142   :  { %654 = shalt.err (!%p651_p3)
}
 0x143   :  { %378 = dma.vmem_to_hbm [thread:$0]  %s373_s22, 1024, %s754_s3, [#allocation4], %s663_s24, %s663_s24, %s664_s25  }
 0x144   :  { %659 = dma.done.wait [#allocation4], 1024  }
 0x145   :  { %660 = vsyncadd [#allocation4], 4294966272 }
 0x146   :  { %382 = vsyncpa [#allocation3], 1 }
 0x147   :  { %383 = vsyncpa [#allocation6], 1 }
 0x148   :  { %384 = vsyncpa [#allocation4], 1 }

</bundles_post_ra>
